<compile_context>
chip_gen: v7x
topology: tpu7x:2x2x1
jax: 0.10.0
libtpu: 0.0.40
codegen_flags: <defaults>
</compile_context>

<pallas_src>
import functools
import math

import jax
import jax.numpy as jnp
from jax import lax
from jax.experimental import pallas as pl
from jax.experimental.pallas import tpu as pltpu


def _round_up(v, m):
    return ((v + m - 1) // m) * m


def _tpu_vmem_and_lane_mult():
    """(per-core VMEM bytes, N-dim padding multiple) with safe fallbacks."""
    vmem_cap = 64 * 1024 * 1024          # conservative default: v7x per-TC
    lane_mult = 128                       # v5e MXU is 128-wide
    try:
        vmem_cap = int(getattr(pltpu.get_tpu_info(), "vmem_capacity_bytes",
                               vmem_cap))
    except Exception:
        pass
    try:
        kind = jax.devices()[0].device_kind.lower()
        if any(g in kind for g in ("v6", "v7", "trillium")):
            lane_mult = 256               # 256-wide MXU on v6e / v7x
    except Exception:
        pass
    return vmem_cap, lane_mult


def _nonlinear_kernel(x_ref, w1_ref, b1_ref, w2_ref, b2_ref, o_ref, h_ref, *,
                      gelu_approximate):
    # grid = (row-tile i, out-feature-tile j); j is innermost ("arbitrary").
    # x_ref : (tm, in_p)      row tile of activations (compute dtype)
    # w1_ref: (in_p, hid_p)   resident weight (constant across grid)
    # b1_ref: (1, hid_p)      f32
    # w2_ref: (hid_p, tn)     weight tile (constant when n_tiles == 1)
    # b2_ref: (1, tn)         f32
    # o_ref : (tm, tn)
    # h_ref : (tm, hid_p)     post-GELU hidden scratch (compute dtype)
    @pl.when(pl.program_id(1) == 0)
    def _():
        h = jnp.dot(x_ref[...], w1_ref[...],
                    preferred_element_type=jnp.float32)
        h = h + b1_ref[...]
        if gelu_approximate:
            h = jax.nn.gelu(h, approximate=True)       # tanh GELU -> EUP slot
        else:
            # erf GELU: bit-parity with torch.nn.functional.gelu default.
            h = 0.5 * h * (1.0 + lax.erf(h * (1.0 / math.sqrt(2.0))))
        h_ref[...] = h.astype(h_ref.dtype)

    y = jnp.dot(h_ref[...], w2_ref[...], preferred_element_type=jnp.float32)
    o_ref[...] = (y + b2_ref[...]).astype(o_ref.dtype)


@functools.partial(
    jax.jit,
    static_argnames=("tm", "tn", "single_buffer_weights", "gelu_approximate",
                     "compute_dtype"))
def nonlinear_forward(x, w1, b1, w2, b2, *, tm=512, tn=None,
                      single_buffer_weights=True, gelu_approximate=False,
                      compute_dtype=None):
    """x: (..., in_dim) -> (..., out_dim) computed as layer2(gelu(layer1(x)))."""
    in_dim = x.shape[-1]
    hidden = w1.shape[1]
    out_dim = w2.shape[1]
    lead_shape = x.shape[:-1]
    out_dtype = x.dtype

    vmem_cap, lane_mult = _tpu_vmem_and_lane_mult()

    # ---- compute dtype: both MXU operands in the SAME dtype ------------------
    if compute_dtype is None:
        if (jnp.dtype(x.dtype) == jnp.dtype(jnp.bfloat16)
                or jnp.dtype(w1.dtype) == jnp.dtype(jnp.bfloat16)):
            cdt = jnp.dtype(jnp.bfloat16)
        else:
            cdt = jnp.dtype(jnp.promote_types(x.dtype, w1.dtype))
    else:
        cdt = jnp.dtype(compute_dtype)

    x2d = x.reshape(-1, in_dim).astype(cdt)   # host-side cast: halves x DMA if bf16
    w1c = w1.astype(cdt)
    w2c = w2.astype(cdt)
    b1f = b1.astype(jnp.float32)
    b2f = b2.astype(jnp.float32)

    # ---- feature padding ------------------------------------------------------
    # Pad hidden/out to the MXU width (128 v5e, 256 v6e/v7x) for lane-dense
    # stores and a fully fed systolic array. Padding is exact: GELU(0+0) = 0
    # and padded w2 rows are 0; the pad is sliced off at the end.
    in_p = in_dim
    if in_dim >= 128 and in_dim % 128 != 0:
        # Only pad K when it is already large (skip for e.g. in_dim=32: the
        # extra x DMA bytes would outweigh the MXU-depth gain).
        in_p = _round_up(in_dim, 128)
        x2d = jnp.pad(x2d, ((0, 0), (0, in_p - in_dim)))
        w1c = jnp.pad(w1c, ((0, in_p - in_dim), (0, 0)))
    hid_p = _round_up(hidden, lane_mult)
    out_p = _round_up(out_dim, lane_mult)
    if hid_p != hidden:
        w1c = jnp.pad(w1c, ((0, 0), (0, hid_p - hidden)))
        b1f = jnp.pad(b1f, ((0, hid_p - hidden),))
        w2c = jnp.pad(w2c, ((0, hid_p - hidden), (0, 0)))
    if out_p != out_dim:
        w2c = jnp.pad(w2c, ((0, 0), (0, out_p - out_dim)))
        b2f = jnp.pad(b2f, ((0, out_p - out_dim),))

    # ---- row tile (sublane-packing aware) -------------------------------------
    m = x2d.shape[0]
    cdt_size = cdt.itemsize
    out_size = jnp.dtype(out_dtype).itemsize
    sublane = max(8, 32 // cdt_size, 32 // out_size)   # 8 f32 / 16 bf16 / 32 i8
    tm_eff = _round_up(min(tm, max(m, 1)), sublane)

    # ---- VMEM budget / feature-tiling fallback --------------------------------
    wbuf = 1 if single_buffer_weights else 2
    budget = int(vmem_cap * 0.6)   # headroom for Mosaic internals / temporaries

    def vmem_need(tm_, tn_):
        n_tiles_ = max(1, _round_up(out_p, tn_) // tn_)
        w2buf = wbuf if n_tiles_ == 1 else 2
        resident = wbuf * (in_p * hid_p * cdt_size + hid_p * 4)       # w1, b1
        w2_bytes = w2buf * (hid_p * tn_ * cdt_size + tn_ * 4)         # w2, b2 tile
        io = 2 * tm_ * in_p * cdt_size + 2 * tm_ * tn_ * out_size     # x / out
        scratch = tm_ * hid_p * cdt_size                              # h scratch
        transient = 2 * tm_ * max(hid_p, tn_) * 4                     # f32 temps
        return resident + w2_bytes + io + scratch + transient

    tn_eff = out_p if tn is None else _round_up(min(tn, out_p), lane_mult)
    # Shrink the output-feature tile first (matters on v7x's 64 MiB VMEM),
    # then the row tile, instead of silently over-committing the scoped limit.
    while vmem_need(tm_eff, tn_eff) > budget and tn_eff > lane_mult:
        tn_eff = max(lane_mult, _round_up(tn_eff // 2, lane_mult))
    while vmem_need(tm_eff, tn_eff) > budget and tm_eff > sublane:
        tm_eff = max(sublane, _round_up(tm_eff // 2, sublane))
    # TODO(synk): add a K-loop over hid_p chunks with an f32 VMEM accumulator
    # for hidden sizes where even a single (in_p, hid_p) w1 slab cannot fit.

    out_pad = _round_up(out_p, tn_eff)
    if out_pad != out_p:
        w2c = jnp.pad(w2c, ((0, 0), (0, out_pad - out_p)))
        b2f = jnp.pad(b2f, ((0, out_pad - out_p),))
    m_pad = _round_up(m, tm_eff)
    if m_pad != m:
        # TODO(synk): for very large activations, mask the last tile in-kernel
        # instead of materializing a padded HBM copy of x.
        x2d = jnp.pad(x2d, ((0, m_pad - m), (0, 0)))

    b1r = b1f.reshape(1, hid_p)
    b2r = b2f.reshape(1, out_pad)
    m_tiles = m_pad // tm_eff
    n_tiles = out_pad // tn_eff

    need = vmem_need(tm_eff, tn_eff)
    vmem_limit = int(min(vmem_cap * 0.85, max(need * 1.5, 32 * 1024 * 1024)))

    # Grid-constant weights/biases -> single-buffer them to halve VMEM use.
    const_kwargs = (dict(pipeline_mode=pl.Buffered(1))
                    if single_buffer_weights else {})
    w2_kwargs = const_kwargs if n_tiles == 1 else {}

    kernel = functools.partial(_nonlinear_kernel,
                               gelu_approximate=gelu_approximate)

    out2d = pl.pallas_call(
        kernel,
        out_shape=jax.ShapeDtypeStruct((m_pad, out_pad), out_dtype),
        grid_spec=pltpu.PrefetchScalarGridSpec(
            num_scalar_prefetch=0,
            grid=(m_tiles, n_tiles),
            in_specs=[
                pl.BlockSpec((tm_eff, in_p), lambda i, j: (i, 0)),
                pl.BlockSpec((in_p, hid_p), lambda i, j: (0, 0), **const_kwargs),
                pl.BlockSpec((1, hid_p), lambda i, j: (0, 0), **const_kwargs),
                pl.BlockSpec((hid_p, tn_eff), lambda i, j: (0, j), **w2_kwargs),
                pl.BlockSpec((1, tn_eff), lambda i, j: (0, j), **w2_kwargs),
            ],
            out_specs=pl.BlockSpec((tm_eff, tn_eff), lambda i, j: (i, j)),
            scratch_shapes=[pltpu.VMEM((tm_eff, hid_p), cdt)],
        ),
        compiler_params=pltpu.CompilerParams(
            dimension_semantics=("parallel", "arbitrary"),
            vmem_limit_bytes=vmem_limit,
        ),
    )(x2d, w1c, b1r, w2c, b2r)

    out2d = out2d[:m, :out_dim]
    return out2d.reshape(*lead_shape, out_dim)


def init_nonlinear_params(key, in_dim, out_dim, hidden=None, dtype=jnp.float32):
    """Deterministic init mirroring nn.Linear's default U(-1/sqrt(fan_in), ...)."""
    if hidden is None:
        hidden = in_dim
    k1, k2, k3, k4 = jax.random.split(key, 4)
    bound1 = 1.0 / math.sqrt(in_dim)
    bound2 = 1.0 / math.sqrt(hidden)
    # Stored as [in_features, out_features] (transposed vs torch) for x @ W.
    w1 = jax.random.uniform(k1, (in_dim, hidden), dtype, -bound1, bound1)
    b1 = jax.random.uniform(k2, (hidden,), dtype, -bound1, bound1)
    w2 = jax.random.uniform(k3, (hidden, out_dim), dtype, -bound2, bound2)
    b2 = jax.random.uniform(k4, (out_dim,), dtype, -bound2, bound2)
    return w1, b1, w2, b2


if __name__ == "__main__":
    key = jax.random.PRNGKey(0)
    kx, kp = jax.random.split(key)

    batch, seq, in_dim, hidden, out_dim = 2, 8, 32, 32, 16
    x = jax.random.normal(kx, (batch, seq, in_dim), dtype=jnp.float32)
    w1, b1, w2, b2 = init_nonlinear_params(kp, in_dim, out_dim, hidden)

    def run(**kw):
        try:
            return nonlinear_forward(x, w1, b1, w2, b2, **kw)
        except Exception:
            # Fallback for JAX versions where single-buffered (pl.Buffered(1))
            # weight BlockSpecs are not supported by the grid pipeline.
            kw = dict(kw)
            kw["single_buffer_weights"] = False
            return nonlinear_forward(x, w1, b1, w2, b2, **kw)

    # Pure-JAX reference (erf-GELU, matches torch F.gelu default).
    ref = jnp.dot(jax.nn.gelu(jnp.dot(x, w1) + b1, approximate=False), w2) + b2

    # 1) Exact path: f32 compute, erf GELU -> bit-level parity with the module.
    out = jax.block_until_ready(run())
    assert out.shape == (batch, seq, out_dim)
    assert jnp.allclose(out, ref, atol=1e-5, rtol=1e-5)

    # 2) Fast path: bf16 MXU operands (f32 accumulation) + tanh GELU on the EUP.
    out_fast = jax.block_until_ready(
        run(compute_dtype=jnp.bfloat16, gelu_approximate=True))
    assert out_fast.shape == (batch, seq, out_dim)
    assert jnp.allclose(out_fast, ref, atol=5e-2, rtol=5e-2)

    print("KERNEL_OK")
</pallas_src>

<mosaic_0001>
module attributes {stable_mosaic.version = 11 : i64} {
  func.func @_nonlinear_kernel(%arg0: i32, %arg1: i32, %arg2: memref<16x32xf32, #tpu.memory_space<vmem>>, %arg3: memref<32x128xf32, #tpu.memory_space<vmem>>, %arg4: memref<1x128xf32, #tpu.memory_space<vmem>>, %arg5: memref<128x128xf32, #tpu.memory_space<vmem>>, %arg6: memref<1x128xf32, #tpu.memory_space<vmem>>, %arg7: memref<16x128xf32, #tpu.memory_space<vmem>>, %arg8: memref<16x128xf32, #tpu.memory_space<vmem>>) attributes {dimension_semantics = [#tpu.dimension_semantics<parallel>, #tpu.dimension_semantics<arbitrary>], iteration_bounds = array<i64: 1, 1>, scalar_prefetch = 0 : i64, scratch_operands = 1 : i64, tpu.core_type = #tpu.core_type<tc>, window_params = [{transform_indices = @transform_0, window_bounds = array<i64: 16, 32>}, {pipeline_mode = #tpu.pipeline_mode<synchronous>, transform_indices = @transform_1, window_bounds = array<i64: 32, 128>}, {pipeline_mode = #tpu.pipeline_mode<synchronous>, transform_indices = @transform_2, window_bounds = array<i64: 1, 128>}, {pipeline_mode = #tpu.pipeline_mode<synchronous>, transform_indices = @transform_3, window_bounds = array<i64: 128, 128>}, {pipeline_mode = #tpu.pipeline_mode<synchronous>, transform_indices = @transform_4, window_bounds = array<i64: 1, 128>}, {transform_indices = @transform_5, window_bounds = array<i64: 16, 128>}]} {
    %c0_i32 = arith.constant 0 : i32
    %0 = arith.cmpi eq, %arg1, %c0_i32 : i32
    %1 = arith.extui %0 : i1 to i32
    %c0_i32_0 = arith.constant 0 : i32
    %2 = arith.cmpi ne, %1, %c0_i32_0 : i32
    scf.if %2 {
      %c0_8 = arith.constant 0 : index
      %c0_9 = arith.constant 0 : index
      %10 = vector.load %arg2[%c0_8, %c0_9] : memref<16x32xf32, #tpu.memory_space<vmem>>, vector<16x32xf32>
      %c0_10 = arith.constant 0 : index
      %c0_11 = arith.constant 0 : index
      %11 = vector.load %arg3[%c0_10, %c0_11] : memref<32x128xf32, #tpu.memory_space<vmem>>, vector<32x128xf32>
      %cst_12 = arith.constant dense<0.000000e+00> : vector<16x128xf32>
      %12 = tpu.matmul %10, %11, %cst_12 {dimension_numbers = #tpu.dot_dimension_numbers<[1], [0], [0], [1], [0, 0, 1, 1], [], []>} : vector<16x32xf32>, vector<32x128xf32>, vector<16x128xf32> -> vector<16x128xf32>
      %c0_13 = arith.constant 0 : index
      %c0_14 = arith.constant 0 : index
      %13 = vector.load %arg4[%c0_13, %c0_14] : memref<1x128xf32, #tpu.memory_space<vmem>>, vector<1x128xf32>
      %14 = vector.broadcast %13 : vector<1x128xf32> to vector<16x128xf32>
      %15 = arith.addf %12, %14 : vector<16x128xf32>
      %cst_15 = arith.constant 5.000000e-01 : f32
      %16 = vector.broadcast %cst_15 : f32 to vector<16x128xf32>
      %17 = arith.mulf %16, %15 : vector<16x128xf32>
      %cst_16 = arith.constant 0.707106769 : f32
      %18 = vector.broadcast %cst_16 : f32 to vector<16x128xf32>
      %19 = arith.mulf %15, %18 : vector<16x128xf32>
      %20 = math.erf %19 : vector<16x128xf32>
      %cst_17 = arith.constant 1.000000e+00 : f32
      %21 = vector.broadcast %cst_17 : f32 to vector<16x128xf32>
      %22 = arith.addf %21, %20 : vector<16x128xf32>
      %23 = arith.mulf %17, %22 : vector<16x128xf32>
      %c0_18 = arith.constant 0 : index
      %c0_19 = arith.constant 0 : index
      %24 = vector.load %arg8[%c0_18, %c0_19] : memref<16x128xf32, #tpu.memory_space<vmem>>, vector<16x128xf32>
      tpu.vector_store %arg8[%c0_18, %c0_19], %23 {strides = array<i32>} : memref<16x128xf32, #tpu.memory_space<vmem>>, vector<16x128xf32>,
    } else {
    }
    %c0 = arith.constant 0 : index
    %c0_1 = arith.constant 0 : index
    %3 = vector.load %arg8[%c0, %c0_1] : memref<16x128xf32, #tpu.memory_space<vmem>>, vector<16x128xf32>
    %c0_2 = arith.constant 0 : index
    %c0_3 = arith.constant 0 : index
    %4 = vector.load %arg5[%c0_2, %c0_3] : memref<128x128xf32, #tpu.memory_space<vmem>>, vector<128x128xf32>
    %cst = arith.constant dense<0.000000e+00> : vector<16x128xf32>
    %5 = tpu.matmul %3, %4, %cst {dimension_numbers = #tpu.dot_dimension_numbers<[1], [0], [0], [1], [0, 0, 1, 1], [], []>} : vector<16x128xf32>, vector<128x128xf32>, vector<16x128xf32> -> vector<16x128xf32>
    %c0_4 = arith.constant 0 : index
    %c0_5 = arith.constant 0 : index
    %6 = vector.load %arg6[%c0_4, %c0_5] : memref<1x128xf32, #tpu.memory_space<vmem>>, vector<1x128xf32>
    %7 = vector.broadcast %6 : vector<1x128xf32> to vector<16x128xf32>
    %8 = arith.addf %5, %7 : vector<16x128xf32>
    %c0_6 = arith.constant 0 : index
    %c0_7 = arith.constant 0 : index
    %9 = vector.load %arg7[%c0_6, %c0_7] : memref<16x128xf32, #tpu.memory_space<vmem>>, vector<16x128xf32>
    tpu.vector_store %arg7[%c0_6, %c0_7], %8 {strides = array<i32>} : memref<16x128xf32, #tpu.memory_space<vmem>>, vector<16x128xf32>,
    return
  }
  func.func @transform_0(%arg0: i32, %arg1: i32) -> (i32, i32) {
    %c0_i32 = arith.constant 0 : i32
    %c0_i32_0 = arith.constant 0 : i32
    return %arg0, %c0_i32 : i32, i32
  }
  func.func @transform_1(%arg0: i32, %arg1: i32) -> (i32, i32) {
    %c0_i32 = arith.constant 0 : i32
    %c0_i32_0 = arith.constant 0 : i32
    %c0_i32_1 = arith.constant 0 : i32
    return %c0_i32, %c0_i32_0 : i32, i32
  }
  func.func @transform_2(%arg0: i32, %arg1: i32) -> (i32, i32) {
    %c0_i32 = arith.constant 0 : i32
    %c0_i32_0 = arith.constant 0 : i32
    %c0_i32_1 = arith.constant 0 : i32
    return %c0_i32, %c0_i32_0 : i32, i32
  }
  func.func @transform_3(%arg0: i32, %arg1: i32) -> (i32, i32) {
    %c0_i32 = arith.constant 0 : i32
    %c0_i32_0 = arith.constant 0 : i32
    return %c0_i32, %arg1 : i32, i32
  }
  func.func @transform_4(%arg0: i32, %arg1: i32) -> (i32, i32) {
    %c0_i32 = arith.constant 0 : i32
    %c0_i32_0 = arith.constant 0 : i32
    return %c0_i32, %arg1 : i32, i32
  }
  func.func @transform_5(%arg0: i32, %arg1: i32) -> (i32, i32) {
    %c0_i32 = arith.constant 0 : i32
    return %arg0, %arg1 : i32, i32
  }
}

module attributes {stable_mosaic.version = 11 : i64} {
  func.func @_nonlinear_kernel(%arg0: i32, %arg1: i32, %arg2: memref<16x32xf32, #tpu.memory_space<vmem>>, %arg3: memref<32x128xf32, #tpu.memory_space<vmem>>, %arg4: memref<1x128xf32, #tpu.memory_space<vmem>>, %arg5: memref<128x128xf32, #tpu.memory_space<vmem>>, %arg6: memref<1x128xf32, #tpu.memory_space<vmem>>, %arg7: memref<16x128xf32, #tpu.memory_space<vmem>>, %arg8: memref<16x128xf32, #tpu.memory_space<vmem>>) attributes {dimension_semantics = [#tpu.dimension_semantics<parallel>, #tpu.dimension_semantics<arbitrary>], iteration_bounds = array<i64: 1, 1>, scalar_prefetch = 0 : i64, scratch_operands = 1 : i64, tpu.core_type = #tpu.core_type<tc>, window_params = [{transform_indices = @transform_0, window_bounds = array<i64: 16, 32>}, {pipeline_mode = #tpu.pipeline_mode<synchronous>, transform_indices = @transform_1, window_bounds = array<i64: 32, 128>}, {pipeline_mode = #tpu.pipeline_mode<synchronous>, transform_indices = @transform_2, window_bounds = array<i64: 1, 128>}, {transform_indices = @transform_3, window_bounds = array<i64: 128, 128>}, {transform_indices = @transform_4, window_bounds = array<i64: 1, 128>}, {transform_indices = @transform_5, window_bounds = array<i64: 16, 128>}]} {
    %c0_i32 = arith.constant 0 : i32
    %0 = arith.cmpi eq, %arg1, %c0_i32 : i32
    %1 = arith.extui %0 : i1 to i32
    %c0_i32_0 = arith.constant 0 : i32
    %2 = arith.cmpi ne, %1, %c0_i32_0 : i32
    scf.if %2 {
      %c0_8 = arith.constant 0 : index
      %c0_9 = arith.constant 0 : index
      %10 = vector.load %arg2[%c0_8, %c0_9] : memref<16x32xf32, #tpu.memory_space<vmem>>, vector<16x32xf32>
      %c0_10 = arith.constant 0 : index
      %c0_11 = arith.constant 0 : index
      %11 = vector.load %arg3[%c0_10, %c0_11] : memref<32x128xf32, #tpu.memory_space<vmem>>, vector<32x128xf32>
      %cst_12 = arith.constant dense<0.000000e+00> : vector<16x128xf32>
      %12 = tpu.matmul %10, %11, %cst_12 {dimension_numbers = #tpu.dot_dimension_numbers<[1], [0], [0], [1], [0, 0, 1, 1], [], []>} : vector<16x32xf32>, vector<32x128xf32>, vector<16x128xf32> -> vector<16x128xf32>
      %c0_13 = arith.constant 0 : index
      %c0_14 = arith.constant 0 : index
      %13 = vector.load %arg4[%c0_13, %c0_14] : memref<1x128xf32, #tpu.memory_space<vmem>>, vector<1x128xf32>
      %14 = vector.broadcast %13 : vector<1x128xf32> to vector<16x128xf32>
      %15 = arith.addf %12, %14 : vector<16x128xf32>
      %cst_15 = arith.constant 5.000000e-01 : f32
      %16 = vector.broadcast %cst_15 : f32 to vector<16x128xf32>
      %17 = arith.mulf %16, %15 : vector<16x128xf32>
      %cst_16 = arith.constant 0.707106769 : f32
      %18 = vector.broadcast %cst_16 : f32 to vector<16x128xf32>
      %19 = arith.mulf %15, %18 : vector<16x128xf32>
      %20 = math.erf %19 : vector<16x128xf32>
      %cst_17 = arith.constant 1.000000e+00 : f32
      %21 = vector.broadcast %cst_17 : f32 to vector<16x128xf32>
      %22 = arith.addf %21, %20 : vector<16x128xf32>
      %23 = arith.mulf %17, %22 : vector<16x128xf32>
      %c0_18 = arith.constant 0 : index
      %c0_19 = arith.constant 0 : index
      %24 = vector.load %arg8[%c0_18, %c0_19] : memref<16x128xf32, #tpu.memory_space<vmem>>, vector<16x128xf32>
      tpu.vector_store %arg8[%c0_18, %c0_19], %23 {strides = array<i32>} : memref<16x128xf32, #tpu.memory_space<vmem>>, vector<16x128xf32>,
    } else {
    }
    %c0 = arith.constant 0 : index
    %c0_1 = arith.constant 0 : index
    %3 = vector.load %arg8[%c0, %c0_1] : memref<16x128xf32, #tpu.memory_space<vmem>>, vector<16x128xf32>
    %c0_2 = arith.constant 0 : index
    %c0_3 = arith.constant 0 : index
    %4 = vector.load %arg5[%c0_2, %c0_3] : memref<128x128xf32, #tpu.memory_space<vmem>>, vector<128x128xf32>
    %cst = arith.constant dense<0.000000e+00> : vector<16x128xf32>
    %5 = tpu.matmul %3, %4, %cst {dimension_numbers = #tpu.dot_dimension_numbers<[1], [0], [0], [1], [0, 0, 1, 1], [], []>} : vector<16x128xf32>, vector<128x128xf32>, vector<16x128xf32> -> vector<16x128xf32>
    %c0_4 = arith.constant 0 : index
    %c0_5 = arith.constant 0 : index
    %6 = vector.load %arg6[%c0_4, %c0_5] : memref<1x128xf32, #tpu.memory_space<vmem>>, vector<1x128xf32>
    %7 = vector.broadcast %6 : vector<1x128xf32> to vector<16x128xf32>
    %8 = arith.addf %5, %7 : vector<16x128xf32>
    %c0_6 = arith.constant 0 : index
    %c0_7 = arith.constant 0 : index
    %9 = vector.load %arg7[%c0_6, %c0_7] : memref<16x128xf32, #tpu.memory_space<vmem>>, vector<16x128xf32>
    tpu.vector_store %arg7[%c0_6, %c0_7], %8 {strides = array<i32>} : memref<16x128xf32, #tpu.memory_space<vmem>>, vector<16x128xf32>,
    return
  }
  func.func @transform_0(%arg0: i32, %arg1: i32) -> (i32, i32) {
    %c0_i32 = arith.constant 0 : i32
    %c0_i32_0 = arith.constant 0 : i32
    return %arg0, %c0_i32 : i32, i32
  }
  func.func @transform_1(%arg0: i32, %arg1: i32) -> (i32, i32) {
    %c0_i32 = arith.constant 0 : i32
    %c0_i32_0 = arith.constant 0 : i32
    %c0_i32_1 = arith.constant 0 : i32
    return %c0_i32, %c0_i32_0 : i32, i32
  }
  func.func @transform_2(%arg0: i32, %arg1: i32) -> (i32, i32) {
    %c0_i32 = arith.constant 0 : i32
    %c0_i32_0 = arith.constant 0 : i32
    %c0_i32_1 = arith.constant 0 : i32
    return %c0_i32, %c0_i32_0 : i32, i32
  }
  func.func @transform_3(%arg0: i32, %arg1: i32) -> (i32, i32) {
    %c0_i32 = arith.constant 0 : i32
    %c0_i32_0 = arith.constant 0 : i32
    return %c0_i32, %arg1 : i32, i32
  }
  func.func @transform_4(%arg0: i32, %arg1: i32) -> (i32, i32) {
    %c0_i32 = arith.constant 0 : i32
    %c0_i32_0 = arith.constant 0 : i32
    return %c0_i32, %arg1 : i32, i32
  }
  func.func @transform_5(%arg0: i32, %arg1: i32) -> (i32, i32) {
    %c0_i32 = arith.constant 0 : i32
    return %arg0, %arg1 : i32, i32
  }
}

</mosaic_0001>

<bundles_post_ra>
// kernel: nonlinear_forward.1
= control target key start
LH: loop header
LB: loop body
LE: loop exit
PB: predicated region body
PF: predicated region fallthrough
CT: control target
= control target key end

     0   :  { %vm37_vm0 = vcmask 261120   ;;  %s465_s1 = inlined_call_operand.vmem [shape: f32[32,128], index: 1, kind: input, shape index: {}]   ;;  %s466_s0 = inlined_call_operand.vmem [shape: f32[16,32], index: 0, kind: input, shape index: {}]   ;;  %s467_s3 = inlined_call_operand.vmem [shape: f32[128,128], index: 3, kind: input, shape index: {}]   ;;  %s468_s2 = inlined_call_operand.vmem [shape: f32[1,128], index: 2, kind: input, shape index: {}]   ;;  %s469_s4 = inlined_call_operand.vmem [shape: f32[1,128], index: 4, kind: input, shape index: {}]   ;;  %s470_s5 = inlined_call_operand.vmem [shape: f32[16,128], index: 5, kind: output, shape index: {}]  }
   0x1   :  { %v26_v0 = vld [vmem:[%s465_s1] sm:$0xff]  ;;  %v27_v1 = vld [vmem:[%s465_s1 + $0x8] sm:$0xff]  ;;  %v28_v2 = vld [vmem:[%s465_s1 + $0x10] sm:$0xff] }
   0x2   :  { %v311_v3 = vpack.c.bf16 %v27_v1, %v26_v0  ;;  %v29_v4 = vld [vmem:[%s465_s1 + $0x18] sm:$0xff]  ;;  %v24_v5 = vld [vmem:[%s466_s0] sm:$0xff]  ;;  %v134_v8 = vld [vmem:[%s467_s3 + $0x8] sm:$0xff] }
   0x3   :  { %v315_v6 = vpack.c.bf16 %v29_v4, %v28_v2  ;;  %273 = vmatprep.mubr.msk.f32.mxu0 %vm37_vm0, %v24_v5  ;;  %v133_v7 = vld [vmem:[%s467_s3] sm:$0xff]  ;;  %v135_v9 = vld [vmem:[%s467_s3 + $0x10] sm:$0xff]  ;;  %v136_v11 = vld [vmem:[%s467_s3 + $0x18] sm:$0xff] }
   0x4   :  { %312 = vmatprep.subr.bf16.mxu0 %v311_v3  ;;  %v319_v10 = vpack.c.bf16 %v134_v8, %v133_v7  ;;  %v323_v12 = vpack.c.bf16 %v136_v11, %v135_v9  ;;  %v137_v13 = vld [vmem:[%s467_s3 + $0x20] sm:$0xff]  ;;  %v138_v14 = vld [vmem:[%s467_s3 + $0x28] sm:$0xff]  ;;  %v139_v17 = vld [vmem:[%s467_s3 + $0x30] sm:$0xff] }
   0x5   :  { %314 = vmatpush3.bf16.msra.mxu0 %v311_v3  ;;  %v327_v15 = vpack.c.bf16 %v138_v14, %v137_v13  ;;  %v25_v16 = vld [vmem:[%s466_s0 + $0x8] sm:$0xff]  ;;  %v140_v18 = vld [vmem:[%s467_s3 + $0x38] sm:$0xff]  ;;  %v141_v20 = vld [vmem:[%s467_s3 + $0x40] sm:$0xff] }
   0x6   :  { %316 = vmatprep.subr.bf16.mxu0 %v315_v6  ;;  %320 = vmatprep.subr.bf16.mxu1 %v319_v10  ;;  %v331_v19 = vpack.c.bf16 %v140_v18, %v139_v17  ;;  %v142_v21 = vld [vmem:[%s467_s3 + $0x48] sm:$0xff]  ;;  %v143_v23 = vld [vmem:[%s467_s3 + $0x50] sm:$0xff]  ;;  %v144_v24 = vld [vmem:[%s467_s3 + $0x58] sm:$0xff] }
   0x7   :  { %322 = vmatpush3.bf16.msra.mxu1 %v319_v10  ;;  %v335_v22 = vpack.c.bf16 %v142_v21, %v141_v20  ;;  %v339_v25 = vpack.c.bf16 %v144_v24, %v143_v23  ;;  %v145_v26 = vld [vmem:[%s467_s3 + $0x60] sm:$0xff]  ;;  %v146_v27 = vld [vmem:[%s467_s3 + $0x68] sm:$0xff]  ;;  %v147_v29 = vld [vmem:[%s467_s3 + $0x70] sm:$0xff] }
   0x8   :  { %324 = vmatprep.subr.bf16.mxu1 %v323_v12  ;;  %v343_v28 = vpack.c.bf16 %v146_v27, %v145_v26  ;;  %v148_v30 = vld [vmem:[%s467_s3 + $0x78] sm:$0xff]  ;;  %v237_v32 = vld [vmem:[%s468_s2] ss:$0 sm:$0xff] }
   0x9   :  { %318 = vmatpush3.bf16.msra.mxu0 %v315_v6  ;;  %v347_v31 = vpack.c.bf16 %v148_v30, %v147_v29  ;;  %v240_v47 = vld [vmem:[%s469_s4] ss:$0 sm:$0xff] }
   0xb   :  { %326 = vmatpush3.bf16.msra.mxu1 %v323_v12 }
   0xc   :  { %274 = vmatmul.mubr.msk.f32.vlgmr.msra.gmra.mrb[0].mxu0 %vm37_vm0, %v25_v16  ;;  %328 = vmatprep.subr.bf16.mxu1 %v327_v15 }
   0xf   :  { %330 = vmatpush3.bf16.msra.mxu1 %v327_v15 }
  0x10   :  { %332 = vmatprep.subr.bf16.mxu1 %v331_v19 }
  0x13   :  { %334 = vmatpush3.bf16.msra.mxu1 %v331_v19 }
  0x14   :  { %336 = vmatprep.subr.bf16.mxu1 %v335_v22 }
  0x17   :  { %338 = vmatpush3.bf16.msra.mxu1 %v335_v22 }
  0x18   :  { %340 = vmatprep.subr.bf16.mxu1 %v339_v25 }
  0x1b   :  { %342 = vmatpush3.bf16.msra.mxu1 %v339_v25 }
  0x1c   :  { %344 = vmatprep.subr.bf16.mxu1 %v343_v28 }
  0x1f   :  { %346 = vmatpush3.bf16.msra.mxu1 %v343_v28 }
  0x20   :  { %348 = vmatprep.subr.bf16.mxu1 %v347_v31 }
  0x23   :  { %350 = vmatpush3.bf16.msra.mxu1 %v347_v31 }
  0xdf   :  { %v275_v33 = vpop.f32.mrb[0].mxu0 }
  0xe0   :  { %v116_v34 = vadd.f32 %v275_v33, %v237_v32  ;;  %v110_v35 = vpop.f32.mrb[1].mxu0 }
  0xe1   :  { %v111_v36 = vadd.f32 %v237_v32, %v110_v35 }
  0xe2   :  { %v122_v37 = vmul.f32 0.70710677, %v116_v34  ;;  %v120_v44 = vmul.f32 0.5, %v116_v34 }
  0xe3   :  { %v121_v38 = vmul.f32 0.70710677, %v111_v36  ;;  %v119_v42 = vmul.f32 0.5, %v111_v36 }
  0xe4   :  { %351 = verf.f32 %v122_v37 }
  0xe5   :  { %353 = verf.f32 %v121_v38 }
  0xee   :  { %v352_v39 = vpop.eup %351 }
  0xef   :  { %v354_v40 = vpop.eup %353  ;;  %v126_v41 = vadd.f32 1.0, %v352_v39 }
  0xf0   :  { %v125_v43 = vadd.f32 1.0, %v354_v40 }
  0xf1   :  { %v128_v46 = vmul.f32 %v126_v41, %v120_v44 }
  0xf2   :  { %v127_v45 = vmul.f32 %v125_v43, %v119_v42 }
  0xf4   :  { %308 = vmatprep.mubr.f32.mxu1 %v127_v45 }
  0xf5   :  { %309 = vmatmul.mubr.f32.vlgmr.msra.gmra.mrb[0].mxu1 %v128_v46 }
 0x1c8   :  { %v310_v48 = vpop.f32.mrb[0].mxu1 }
 0x1c9   :  { %v228_v49 = vadd.f32 %v310_v48, %v240_v47  ;;  %v222_v50 = vpop.f32.mrb[1].mxu1 }
 0x1ca   :  { %v223_v51 = vadd.f32 %v240_v47, %v222_v50 }
 0x1cb   :  { %232 = vst [vmem:[%s470_s5 + $0x8] sm:$0xff] %v228_v49 }
 0x1cc   :  { %231 = vst [vmem:[%s470_s5] sm:$0xff] %v223_v51 }

// kernel: nonlinear_forward.1
= control target key start
LH: loop header
LB: loop body
LE: loop exit
PB: predicated region body
PF: predicated region fallthrough
CT: control target
= control target key end

     0   :  { %vm37_vm0 = vcmask 261120   ;;  %s465_s1 = inlined_call_operand.vmem [shape: f32[32,128], index: 1, kind: input, shape index: {}]   ;;  %s466_s0 = inlined_call_operand.vmem [shape: f32[16,32], index: 0, kind: input, shape index: {}]   ;;  %s467_s3 = inlined_call_operand.vmem [shape: f32[128,128], index: 3, kind: input, shape index: {}]   ;;  %s468_s2 = inlined_call_operand.vmem [shape: f32[1,128], index: 2, kind: input, shape index: {}]   ;;  %s469_s4 = inlined_call_operand.vmem [shape: f32[1,128], index: 4, kind: input, shape index: {}]   ;;  %s470_s5 = inlined_call_operand.vmem [shape: f32[16,128], index: 5, kind: output, shape index: {}]  }
   0x1   :  { %v26_v0 = vld [vmem:[%s465_s1] sm:$0xff]  ;;  %v27_v1 = vld [vmem:[%s465_s1 + $0x8] sm:$0xff]  ;;  %v28_v2 = vld [vmem:[%s465_s1 + $0x10] sm:$0xff] }
   0x2   :  { %v311_v3 = vpack.c.bf16 %v27_v1, %v26_v0  ;;  %v29_v4 = vld [vmem:[%s465_s1 + $0x18] sm:$0xff]  ;;  %v24_v5 = vld [vmem:[%s466_s0] sm:$0xff]  ;;  %v134_v8 = vld [vmem:[%s467_s3 + $0x8] sm:$0xff] }
   0x3   :  { %v315_v6 = vpack.c.bf16 %v29_v4, %v28_v2  ;;  %273 = vmatprep.mubr.msk.f32.mxu0 %vm37_vm0, %v24_v5  ;;  %v133_v7 = vld [vmem:[%s467_s3] sm:$0xff]  ;;  %v135_v9 = vld [vmem:[%s467_s3 + $0x10] sm:$0xff]  ;;  %v136_v11 = vld [vmem:[%s467_s3 + $0x18] sm:$0xff] }
   0x4   :  { %312 = vmatprep.subr.bf16.mxu0 %v311_v3  ;;  %v319_v10 = vpack.c.bf16 %v134_v8, %v133_v7  ;;  %v323_v12 = vpack.c.bf16 %v136_v11, %v135_v9  ;;  %v137_v13 = vld [vmem:[%s467_s3 + $0x20] sm:$0xff]  ;;  %v138_v14 = vld [vmem:[%s467_s3 + $0x28] sm:$0xff]  ;;  %v139_v17 = vld [vmem:[%s467_s3 + $0x30] sm:$0xff] }
   0x5   :  { %314 = vmatpush3.bf16.msra.mxu0 %v311_v3  ;;  %v327_v15 = vpack.c.bf16 %v138_v14, %v137_v13  ;;  %v25_v16 = vld [vmem:[%s466_s0 + $0x8] sm:$0xff]  ;;  %v140_v18 = vld [vmem:[%s467_s3 + $0x38] sm:$0xff]  ;;  %v141_v20 = vld [vmem:[%s467_s3 + $0x40] sm:$0xff] }
   0x6   :  { %316 = vmatprep.subr.bf16.mxu0 %v315_v6  ;;  %320 = vmatprep.subr.bf16.mxu1 %v319_v10  ;;  %v331_v19 = vpack.c.bf16 %v140_v18, %v139_v17  ;;  %v142_v21 = vld [vmem:[%s467_s3 + $0x48] sm:$0xff]  ;;  %v143_v23 = vld [vmem:[%s467_s3 + $0x50] sm:$0xff]  ;;  %v144_v24 = vld [vmem:[%s467_s3 + $0x58] sm:$0xff] }
   0x7   :  { %322 = vmatpush3.bf16.msra.mxu1 %v319_v10  ;;  %v335_v22 = vpack.c.bf16 %v142_v21, %v141_v20  ;;  %v339_v25 = vpack.c.bf16 %v144_v24, %v143_v23  ;;  %v145_v26 = vld [vmem:[%s467_s3 + $0x60] sm:$0xff]  ;;  %v146_v27 = vld [vmem:[%s467_s3 + $0x68] sm:$0xff]  ;;  %v147_v29 = vld [vmem:[%s467_s3 + $0x70] sm:$0xff] }
   0x8   :  { %324 = vmatprep.subr.bf16.mxu1 %v323_v12  ;;  %v343_v28 = vpack.c.bf16 %v146_v27, %v145_v26  ;;  %v148_v30 = vld [vmem:[%s467_s3 + $0x78] sm:$0xff]  ;;  %v237_v32 = vld [vmem:[%s468_s2] ss:$0 sm:$0xff] }
   0x9   :  { %318 = vmatpush3.bf16.msra.mxu0 %v315_v6  ;;  %v347_v31 = vpack.c.bf16 %v148_v30, %v147_v29  ;;  %v240_v47 = vld [vmem:[%s469_s4] ss:$0 sm:$0xff] }
   0xb   :  { %326 = vmatpush3.bf16.msra.mxu1 %v323_v12 }
   0xc   :  { %274 = vmatmul.mubr.msk.f32.vlgmr.msra.gmra.mrb[0].mxu0 %vm37_vm0, %v25_v16  ;;  %328 = vmatprep.subr.bf16.mxu1 %v327_v15 }
   0xf   :  { %330 = vmatpush3.bf16.msra.mxu1 %v327_v15 }
  0x10   :  { %332 = vmatprep.subr.bf16.mxu1 %v331_v19 }
  0x13   :  { %334 = vmatpush3.bf16.msra.mxu1 %v331_v19 }
  0x14   :  { %336 = vmatprep.subr.bf16.mxu1 %v335_v22 }
  0x17   :  { %338 = vmatpush3.bf16.msra.mxu1 %v335_v22 }
  0x18   :  { %340 = vmatprep.subr.bf16.mxu1 %v339_v25 }
  0x1b   :  { %342 = vmatpush3.bf16.msra.mxu1 %v339_v25 }
  0x1c   :  { %344 = vmatprep.subr.bf16.mxu1 %v343_v28 }
  0x1f   :  { %346 = vmatpush3.bf16.msra.mxu1 %v343_v28 }
  0x20   :  { %348 = vmatprep.subr.bf16.mxu1 %v347_v31 }
  0x23   :  { %350 = vmatpush3.bf16.msra.mxu1 %v347_v31 }
  0xdf   :  { %v275_v33 = vpop.f32.mrb[0].mxu0 }
  0xe0   :  { %v116_v34 = vadd.f32 %v275_v33, %v237_v32  ;;  %v110_v35 = vpop.f32.mrb[1].mxu0 }
  0xe1   :  { %v111_v36 = vadd.f32 %v237_v32, %v110_v35 }
  0xe2   :  { %v122_v37 = vmul.f32 0.70710677, %v116_v34  ;;  %v120_v44 = vmul.f32 0.5, %v116_v34 }
  0xe3   :  { %v121_v38 = vmul.f32 0.70710677, %v111_v36  ;;  %v119_v42 = vmul.f32 0.5, %v111_v36 }
  0xe4   :  { %351 = verf.f32 %v122_v37 }
  0xe5   :  { %353 = verf.f32 %v121_v38 }
  0xee   :  { %v352_v39 = vpop.eup %351 }
  0xef   :  { %v354_v40 = vpop.eup %353  ;;  %v126_v41 = vadd.f32 1.0, %v352_v39 }
  0xf0   :  { %v125_v43 = vadd.f32 1.0, %v354_v40 }
  0xf1   :  { %v128_v46 = vmul.f32 %v126_v41, %v120_v44 }
  0xf2   :  { %v127_v45 = vmul.f32 %v125_v43, %v119_v42 }
  0xf4   :  { %308 = vmatprep.mubr.f32.mxu1 %v127_v45 }
  0xf5   :  { %309 = vmatmul.mubr.f32.vlgmr.msra.gmra.mrb[0].mxu1 %v128_v46 }
 0x1c8   :  { %v310_v48 = vpop.f32.mrb[0].mxu1 }
 0x1c9   :  { %v228_v49 = vadd.f32 %v310_v48, %v240_v47  ;;  %v222_v50 = vpop.f32.mrb[1].mxu1 }
 0x1ca   :  { %v223_v51 = vadd.f32 %v240_v47, %v222_v50 }
 0x1cb   :  { %232 = vst [vmem:[%s470_s5 + $0x8] sm:$0xff] %v228_v49 }
 0x1cc   :  { %231 = vst [vmem:[%s470_s5] sm:$0xff] %v223_v51 }

</bundles_post_ra>
